<compile_context>
chip_gen: v7x
topology: tpu7x:2x2x1
jax: 0.10.0
libtpu: 0.0.40
codegen_flags: <defaults>
</compile_context>

<pallas_src>
import math

import jax
import jax.numpy as jnp
from jax.experimental import pallas as pl
from jax.experimental.pallas import tpu as pltpu


_MAX_TILE_COLS = 65536            # hard cap on the lane-dense column tile
_VMEM_BUDGET = 10 * 1024 * 1024   # double-buffered working-set budget (bytes)

# Axis of the ORIGINAL (b, c, h, w, z) tensor that gets reduced, per `dim`.
_REDUCE_AXIS = {"xy": 4, "yz": 2, "zx": 3}


def _pad8(n):
    return ((n + 7) // 8) * 8


def _choose_tile_cols(n_cols, x_rows, num_views, x_itemsize):
    """Largest lane-dense column tile that keeps the double-buffered working set
    (input tile + per-view output tiles, sublane-padded) inside the budget."""
    bytes_per_col = _pad8(x_rows) * x_itemsize + num_views * 8 * 4
    budget_cols = _VMEM_BUDGET // (2 * bytes_per_col)
    cap = max(128, min(_MAX_TILE_COLS, (budget_cols // 128) * 128))
    if n_cols <= 128:
        return n_cols                        # full dim (allowed by (8,128) rule)
    if n_cols % 128 == 0:
        return min(n_cols, cap)
    return min((n_cols // 128) * 128, cap)   # Pallas masks the partial last block


# ---------------------------------------------------------------------------
# Kernel 1: flat path ('xy' / 'zx') -- weights @ (Z, N), per-view outputs.
# ---------------------------------------------------------------------------
def _pool_flat_kernel(w_ref, x_ref, *o_refs):
    # (V, Z) @ (Z, TN) on the MXU with f32 accumulation; row v -> output v.
    res = jnp.dot(w_ref[...], x_ref[...], preferred_element_type=jnp.float32)
    for v, o_ref in enumerate(o_refs):
        o_ref[...] = res[v:v + 1].astype(o_ref.dtype)


def _pool_flat(weights, x2):
    """weights: (V, Z); x2: (Z, N) -> tuple of V arrays, each (1, N) f32."""
    V, Z = weights.shape
    Zx, N = x2.shape
    assert Zx == Z

    tn = _choose_tile_cols(N, Z, V, x2.dtype.itemsize)
    grid = (pl.cdiv(N, tn),)

    return pl.pallas_call(
        _pool_flat_kernel,
        out_shape=tuple(jax.ShapeDtypeStruct((1, N), jnp.float32)
                        for _ in range(V)),
        grid_spec=pltpu.PrefetchScalarGridSpec(
            num_scalar_prefetch=0,
            grid=grid,
            in_specs=[
                pl.BlockSpec((V, Z), lambda i: (0, 0)),    # weights: resident
                pl.BlockSpec((Z, tn), lambda i: (0, i)),   # x column tile
            ],
            out_specs=tuple(pl.BlockSpec((1, tn), lambda i: (0, i))
                            for _ in range(V)),
        ),
        compiler_params=pltpu.CompilerParams(
            dimension_semantics=("parallel",),
        ),
    )(weights, x2)


# ---------------------------------------------------------------------------
# Kernel 2: mid-axis path ('yz') -- no HBM transpose, batched over P = b*c.
# ---------------------------------------------------------------------------
def _pool_mid_kernel(w_ref, x_ref, o_ref):
    # x_ref: (1, Z, TQ), o_ref: (1, V, TQ).  One (V,Z)@(Z,TQ) MXU matmul per
    # (batch-row, column-tile) grid point, f32 accumulation.
    o_ref[0] = jnp.dot(
        w_ref[...], x_ref[0], preferred_element_type=jnp.float32
    ).astype(o_ref.dtype)


def _pool_mid(weights, x3):
    """weights: (V, Z); x3: (P, Z, Q) -> (P, V, Q) with out[p] = W @ x3[p]."""
    V, Z = weights.shape
    P, Zx, Q = x3.shape
    assert Zx == Z

    tq = _choose_tile_cols(Q, Z, V, x3.dtype.itemsize)
    grid = (P, pl.cdiv(Q, tq))

    return pl.pallas_call(
        _pool_mid_kernel,
        out_shape=jax.ShapeDtypeStruct((P, V, Q), jnp.float32),
        grid_spec=pltpu.PrefetchScalarGridSpec(
            num_scalar_prefetch=0,
            grid=grid,
            in_specs=[
                pl.BlockSpec((V, Z), lambda p, q: (0, 0)),       # weights
                pl.BlockSpec((1, Z, tq), lambda p, q: (p, 0, q)),
            ],
            out_specs=pl.BlockSpec((1, V, tq), lambda p, q: (p, 0, q)),
        ),
        compiler_params=pltpu.CompilerParams(
            dimension_semantics=("parallel", "parallel"),
        ),
    )(weights, x3)


# ---------------------------------------------------------------------------
# Weight construction (tiny, plain JAX glue).
# ---------------------------------------------------------------------------
def _make_weights(sigmas, z, num_views):
    """Per-view discretized-normal weights over the depth axis, normalized."""
    sigmas_scaled = sigmas.astype(jnp.float32) * jnp.sqrt(jnp.float32(z))   # (V,)
    # mus computed with Python ints exactly like the torch module
    mus = jnp.array(
        [int(i / (num_views - 1) * z) for i in range(num_views)], jnp.float32
    )                                                                        # (V,)
    j = jnp.arange(z, dtype=jnp.float32)[None, :]                            # (1, Z)
    mu = mus[:, None]
    sig = sigmas_scaled[:, None]
    inv_sqrt2 = jnp.float32(1.0 / math.sqrt(2.0))

    def cdf(v):
        return 0.5 * (1.0 + jax.scipy.special.erf((v - mu) / sig * inv_sqrt2))

    w = cdf(j + 1.0) - cdf(j)                                                # (V, Z)
    w = w / jnp.sum(w, axis=1, keepdims=True)
    return w


# ---------------------------------------------------------------------------
# Public wrapper -- matches the torch module's forward.
# ---------------------------------------------------------------------------
def multi_view_normal_dist_weighted_pool3d(x, sigmas, num_views, dim="xy"):
    """Returns a list of num_views arrays (same shapes as the torch module)."""
    assert num_views > 1
    assert dim in ("xy", "yz", "zx")
    red = _REDUCE_AXIS[dim]
    z = x.shape[red]

    weights = _make_weights(sigmas, z, num_views)                  # (V, Z) f32
    if x.dtype != jnp.float32:
        # Keep the dominant x read stream in its native (narrow) width; only
        # the tiny (V, Z) weight matrix is cast so both MXU operands match.
        weights = weights.astype(x.dtype)

    # Remaining axes, in the (b, c, ., .) order the torch module returns.
    rest = tuple(x.shape[a] for a in range(5) if a != red)

    if dim == "yz":
        # Reduce axis (h) is in the middle of the contiguous layout: the
        # batched-matmul view (P, Z, Q) = (b*c, h, w*z) is a FREE reshape, so
        # there is no HBM transpose pass at all.
        P = x.shape[0] * x.shape[1]
        Q = rest[2] * rest[3]
        x3 = x.reshape(P, z, Q)
        out = _pool_mid(weights, x3)                               # (P, V, Q) f32
        return [out[:, i, :].reshape(rest) for i in range(num_views)]

    # 'xy' / 'zx': one XLA transpose puts the reduce axis on sublanes and keeps
    # the remaining axes in (b, c, ., .) order, flattened into one maximally
    # lane-dense column dim; the kernel writes each view's output directly.
    perm = (red,) + tuple(a for a in range(5) if a != red)
    x2 = jnp.transpose(x, perm).reshape(z, -1)                     # (Z, N)
    outs = _pool_flat(weights, x2)                                 # V x (1, N) f32
    return [o.reshape(rest) for o in outs]


# ---------------------------------------------------------------------------
# Pure-JAX reference matching the torch forward (torch-style permutes).
# ---------------------------------------------------------------------------
def _reference(x, sigmas, num_views, dim="xy"):
    if dim == "yz":
        x = jnp.transpose(x, (0, 1, 3, 4, 2))
    elif dim == "zx":
        x = jnp.transpose(x, (0, 1, 2, 4, 3))
    x = jnp.transpose(x, (0, 2, 3, 4, 1))
    b, h, w, z, c = x.shape
    weights = _make_weights(sigmas, z, num_views)
    outs = []
    for i in range(num_views):
        wi = weights[i].reshape(1, 1, 1, z, 1)
        oi = jnp.sum(x * wi, axis=3)            # (b, h, w, c)
        outs.append(jnp.transpose(oi, (0, 3, 1, 2)))
    return outs


if __name__ == "__main__":
    key = jax.random.PRNGKey(0)
    b, c, h, w, z = 2, 4, 16, 16, 8
    num_views = 3

    x = jax.random.normal(key, (b, c, h, w, z), dtype=jnp.float32)
    # nn.Parameter(torch.ones(num_views)) -> deterministic ones init
    sigmas = jnp.ones((num_views,), dtype=jnp.float32)

    # f32 path, all three dim modes, checked against the torch-faithful reference.
    for dim, oshape in (("xy", (b, c, h, w)),
                        ("yz", (b, c, w, z)),
                        ("zx", (b, c, h, z))):
        outs = multi_view_normal_dist_weighted_pool3d(x, sigmas, num_views, dim=dim)
        outs = [jax.block_until_ready(o) for o in outs]
        refs = _reference(x, sigmas, num_views, dim=dim)
        for o, r in zip(outs, refs):
            assert o.shape == oshape, (dim, o.shape)
            assert jnp.allclose(o, r, atol=1e-5, rtol=1e-5), dim

    # bf16 path: x stays bf16 into the kernels (halves the dominant HBM read);
    # exercises both the flat ('xy') and the transpose-free ('yz') kernels.
    xb = x.astype(jnp.bfloat16)
    for dim in ("xy", "yz"):
        outs_b = multi_view_normal_dist_weighted_pool3d(xb, sigmas, num_views, dim=dim)
        outs_b = [jax.block_until_ready(o) for o in outs_b]
        refs = _reference(x, sigmas, num_views, dim=dim)
        for o, r in zip(outs_b, refs):
            assert jnp.allclose(o, r, atol=5e-2, rtol=5e-2), dim

    print("KERNEL_OK")
</pallas_src>

<mosaic_0001>
module attributes {stable_mosaic.version = 11 : i64} {
  func.func @_pool_flat_kernel(%arg0: i32, %arg1: memref<3x8xf32, #tpu.memory_space<vmem>>, %arg2: memref<8x2048xf32, #tpu.memory_space<vmem>>, %arg3: memref<1x2048xf32, #tpu.memory_space<vmem>>, %arg4: memref<1x2048xf32, #tpu.memory_space<vmem>>, %arg5: memref<1x2048xf32, #tpu.memory_space<vmem>>) attributes {dimension_semantics = [#tpu.dimension_semantics<parallel>], iteration_bounds = array<i64: 1>, scalar_prefetch = 0 : i64, scratch_operands = 0 : i64, tpu.core_type = #tpu.core_type<tc>, window_params = [{pipeline_mode = #tpu.pipeline_mode<synchronous>, transform_indices = @transform_0, window_bounds = array<i64: 3, 8>}, {transform_indices = @transform_1, window_bounds = array<i64: 8, 2048>}, {transform_indices = @transform_2, window_bounds = array<i64: 1, 2048>}, {transform_indices = @transform_3, window_bounds = array<i64: 1, 2048>}, {transform_indices = @transform_4, window_bounds = array<i64: 1, 2048>}]} {
    %c0 = arith.constant 0 : index
    %c0_0 = arith.constant 0 : index
    %0 = vector.load %arg1[%c0, %c0_0] : memref<3x8xf32, #tpu.memory_space<vmem>>, vector<3x8xf32>
    %c0_1 = arith.constant 0 : index
    %c0_2 = arith.constant 0 : index
    %1 = vector.load %arg2[%c0_1, %c0_2] : memref<8x2048xf32, #tpu.memory_space<vmem>>, vector<8x2048xf32>
    %cst = arith.constant dense<0.000000e+00> : vector<3x2048xf32>
    %2 = tpu.matmul %0, %1, %cst {dimension_numbers = #tpu.dot_dimension_numbers<[1], [0], [0], [1], [0, 0, 1, 1], [], []>} : vector<3x8xf32>, vector<8x2048xf32>, vector<3x2048xf32> -> vector<3x2048xf32>
    %3 = vector.extract_strided_slice %2 {offsets = [0, 0], sizes = [1, 2048], strides = [1, 1]} : vector<3x2048xf32> to vector<1x2048xf32>
    %c0_3 = arith.constant 0 : index
    %c0_4 = arith.constant 0 : index
    %4 = vector.load %arg3[%c0_3, %c0_4] : memref<1x2048xf32, #tpu.memory_space<vmem>>, vector<1x2048xf32>
    tpu.vector_store %arg3[%c0_3, %c0_4], %3 {strides = array<i32>} : memref<1x2048xf32, #tpu.memory_space<vmem>>, vector<1x2048xf32>,
    %5 = vector.extract_strided_slice %2 {offsets = [1, 0], sizes = [1, 2048], strides = [1, 1]} : vector<3x2048xf32> to vector<1x2048xf32>
    %c0_5 = arith.constant 0 : index
    %c0_6 = arith.constant 0 : index
    %6 = vector.load %arg4[%c0_5, %c0_6] : memref<1x2048xf32, #tpu.memory_space<vmem>>, vector<1x2048xf32>
    tpu.vector_store %arg4[%c0_5, %c0_6], %5 {strides = array<i32>} : memref<1x2048xf32, #tpu.memory_space<vmem>>, vector<1x2048xf32>,
    %7 = vector.extract_strided_slice %2 {offsets = [2, 0], sizes = [1, 2048], strides = [1, 1]} : vector<3x2048xf32> to vector<1x2048xf32>
    %c0_7 = arith.constant 0 : index
    %c0_8 = arith.constant 0 : index
    %8 = vector.load %arg5[%c0_7, %c0_8] : memref<1x2048xf32, #tpu.memory_space<vmem>>, vector<1x2048xf32>
    tpu.vector_store %arg5[%c0_7, %c0_8], %7 {strides = array<i32>} : memref<1x2048xf32, #tpu.memory_space<vmem>>, vector<1x2048xf32>,
    return
  }
  func.func @transform_0(%arg0: i32) -> (i32, i32) {
    %c0_i32 = arith.constant 0 : i32
    %c0_i32_0 = arith.constant 0 : i32
    %c0_i32_1 = arith.constant 0 : i32
    return %c0_i32, %c0_i32_0 : i32, i32
  }
  func.func @transform_1(%arg0: i32) -> (i32, i32) {
    %c0_i32 = arith.constant 0 : i32
    %c0_i32_0 = arith.constant 0 : i32
    return %c0_i32, %arg0 : i32, i32
  }
  func.func @transform_2(%arg0: i32) -> (i32, i32) {
    %c0_i32 = arith.constant 0 : i32
    %c0_i32_0 = arith.constant 0 : i32
    return %c0_i32, %arg0 : i32, i32
  }
  func.func @transform_3(%arg0: i32) -> (i32, i32) {
    %c0_i32 = arith.constant 0 : i32
    %c0_i32_0 = arith.constant 0 : i32
    return %c0_i32, %arg0 : i32, i32
  }
  func.func @transform_4(%arg0: i32) -> (i32, i32) {
    %c0_i32 = arith.constant 0 : i32
    %c0_i32_0 = arith.constant 0 : i32
    return %c0_i32, %arg0 : i32, i32
  }
}

</mosaic_0001>

<bundles_post_ra>
// kernel: tpu_custom_call.1
= control target key start
LH: loop header
LB: loop body
LE: loop exit
PB: predicated region body
PF: predicated region fallthrough
CT: control target
= control target key end

     0   :  { %10 = vsyncpa [#allocation3], 0  ;;  %s1081_s0 = inlined_call_operand.hbm [shape: f32[3,8], index: 0, kind: input, shape index: {}]   ;;  %s1082_s1 = inlined_call_operand.hbm [shape: f32[8,2048], index: 1, kind: input, shape index: {}]   ;;  %s1083_s2 = inlined_call_operand.hbm [shape: f32[1,2048], index: 2, kind: output, shape index: {0}]   ;;  %s1084_s3 = inlined_call_operand.hbm [shape: f32[1,2048], index: 3, kind: output, shape index: {1}]   ;;  %s1085_s4 = inlined_call_operand.hbm [shape: f32[1,2048], index: 4, kind: output, shape index: {2}]  }
   0x1   :  { %11 = vsyncpa [#allocation6], 0 }
   0x2   :  { %12 = vsyncpa [#allocation4], 0 }
   0x3   :  { %13 = vsyncpa [#allocation9], 0  ;;  %s967_s15 = smov [#allocation2]   ;;  %s968_s17 = smov [#allocation5]  }
   0x4   :  { %s20_s16 = sshll.u32 %s967_s15, 4  ;;  %s30_s18 = sshll.u32 %s968_s17, 4  ;;  %s21_s16 = int_to_ptr.vmem [resolvable:$true] %s20_s16  ;;  %s31_s18 = int_to_ptr.vmem [resolvable:$true] %s30_s18 }
   0x5   :  { %s849_s21 = scalar_lea.hbm %s1081_s0, 64 }
   0x6   :  { %p850_p0 = scmp.ne.s32.totalorder %s1081_s0, %s849_s21  ;;  %p853_p1 = scmp.lt.u32.totalorder %s849_s21, %s1081_s0 }
   0x8   :  { %p855_p2 = pnand %p853_p1, %p850_p0 }
   0xa   :  { %858 = shalt.err (!%p855_p2)
}
   0xb   :  { %s859_s26 = scalar_lea.vmem %s21_s16, 64  ;;  %p864_p4 = scmp.lt.s32.totalorder %s21_s16, %s21_s16 }
   0xc   :  { %p860_p3 = scmp.ne.s32.totalorder %s21_s16, %s859_s26  ;;  %p865_p5 = scmp.lt.s32.totalorder %s859_s26, %s859_s26 }
   0xe   :  { %p866_p6 = por %p865_p5, %p864_p4 }
  0x10   :  { %p867_p7 = pnand %p866_p6, %p860_p3 }
  0x12   :  { %870 = shalt.err (!%p867_p7)
}
  0x13   :  { %23 = dma.hbm_to_vmem [thread:$0]  %s1081_s0, 64, %s21_s16, [#allocation3]  }
  0x14   :  { %s871_s5 = scalar_lea.hbm %s1082_s1, 2048 }
  0x15   :  { %p872_p8 = scmp.ne.s32.totalorder %s1082_s1, %s871_s5  ;;  %p875_p9 = scmp.lt.u32.totalorder %s871_s5, %s1082_s1 }
  0x17   :  { %p877_p10 = pnand %p875_p9, %p872_p8 }
  0x19   :  { %880 = shalt.err (!%p877_p10)
}
  0x1a   :  { %s881_s10 = scalar_lea.vmem %s31_s18, 2048  ;;  %p886_p12 = scmp.lt.s32.totalorder %s31_s18, %s31_s18 }
  0x1b   :  { %p882_p11 = scmp.ne.s32.totalorder %s31_s18, %s881_s10  ;;  %p887_p13 = scmp.lt.s32.totalorder %s881_s10, %s881_s10 }
  0x1d   :  { %p888_p0 = por %p887_p13, %p886_p12 }
  0x1f   :  { %p889_p1 = pnand %p888_p0, %p882_p11 }
  0x21   :  { %892 = shalt.err (!%p889_p1)
}
  0x22   :  { %33 = dma.hbm_to_vmem [thread:$0]  %s1082_s1, 2048, %s31_s18, [#allocation6]  }
  0x23   :  { %959 = dma.done.wait [#allocation3], 64  }
  0x24   :  { %960 = vsyncadd [#allocation3], 4294967232 }
  0x25   :  { %961 = dma.done.wait [#allocation6], 2048  }
  0x26   :  { %962 = vsyncadd [#allocation6], 4294965248  ;;  %v969_v0 = vmov 0.0   ;;  %v42_v1 = vld [vmem:[#allocation5 + $0x8] sm:$0xff]  ;;  %v44_v2 = vld [vmem:[#allocation5 + $0x18] sm:$0xff]  ;;  %vm57_vm0 = vcmask 64512   ;;  %v652_v20 = vlaneseq }
  0x27   :  { %125 = vmatprep.mubr.f32.mxu0 %v969_v0  ;;  %196 = vmatprep.mubr.f32.mxu1 %v969_v0  ;;  %v41_v3 = vld [vmem:[#allocation5] sm:$0xff]  ;;  %v43_v4 = vld [vmem:[#allocation5 + $0x10] sm:$0xff]  ;;  %v40_v5 = vld [vmem:[#allocation2] sm:$0x7]  ;;  %v970_v18 = vmov 1966171168  }
  0x28   :  { %61 = vmatprep.subr.mxu0 %v42_v1  ;;  %132 = vmatprep.subr.mxu1 %v44_v2  ;;  %v46_v6 = vld [vmem:[#allocation5 + $0x28] sm:$0xff]  ;;  %v48_v7 = vld [vmem:[#allocation5 + $0x38] sm:$0xff]  ;;  %v45_v8 = vld [vmem:[#allocation5 + $0x20] sm:$0xff]  ;;  %v650_v19 = vunpack.c.l.s4 %v970_v18  ;;  %v653_v22 = vshrl.u32 %v652_v20, 7  ;;  %s971_s1 = smov [#allocation8]   ;;  %s972_s13 = smov [#allocation7]  }
  0x29   :  { %62 = vmatpush1.msra.mxu0 %v41_v3  ;;  %133 = vmatpush1.msra.mxu1 %v43_v4  ;;  %v47_v9 = vld [vmem:[#allocation5 + $0x30] sm:$0xff]  ;;  %v50_v10 = vld [vmem:[#allocation5 + $0x48] sm:$0xff]  ;;  %v52_v11 = vld [vmem:[#allocation5 + $0x58] sm:$0xff]  ;;  %s807_s12 = sshll.u32 %s971_s1, 4  ;;  %s797_s14 = sshll.u32 %s972_s13, 4  ;;  %s808_s12 = int_to_ptr.vmem [resolvable:$true] %s807_s12  ;;  %s1031_s14 = int_to_ptr.vmem [resolvable:$true] %s797_s14 }
  0x2a   :  { %834 = vmatmul.mubr.msk.f32.vlgmr.msra.gmra.mrb[0].mxu0 %vm57_vm0, %v40_v5  ;;  %835 = vmatmul.mubr.msk.f32.vlgmr.msra.gmra.mrb[0].mxu1 %vm57_vm0, %v40_v5  ;;  %v49_v12 = vld [vmem:[#allocation5 + $0x40] sm:$0xff]  ;;  %v51_v13 = vld [vmem:[#allocation5 + $0x50] sm:$0xff]  ;;  %v54_v14 = vld [vmem:[#allocation5 + $0x68] sm:$0xff]  ;;  %v651_v21 = vunpack.c.0.s8 %v650_v19  ;;  %s973_s15 = smov [#allocation10]   ;;  %s893_s17 = scalar_lea.vmem %s808_s12, 256 }
  0x2b   :  { %203 = vmatprep.subr.mxu0 %v46_v6  ;;  %274 = vmatprep.subr.mxu1 %v48_v7  ;;  %v56_v15 = vld [vmem:[#allocation5 + $0x78] sm:$0xff]  ;;  %v53_v16 = vld [vmem:[#allocation5 + $0x60] sm:$0xff]  ;;  %v55_v17 = vld [vmem:[#allocation5 + $0x70] sm:$0xff]  ;;  %s817_s16 = sshll.u32 %s973_s15, 4  ;;  %p894_p2 = scmp.ne.s32.totalorder %s808_s12, %s893_s17  ;;  %s1033_s16 = int_to_ptr.vmem [resolvable:$true] %s817_s16 }
  0x2c   :  { %204 = vmatpush1.msra.mxu0 %v45_v8  ;;  %275 = vmatpush1.msra.mxu1 %v47_v9  ;;  %v654_v25 = vsub.s32 %v651_v21, %v653_v22  ;;  %p898_p3 = scmp.lt.s32.totalorder %s808_s12, %s808_s12  ;;  %p899_p4 = scmp.lt.s32.totalorder %s893_s17, %s893_s17 }
  0x2d   :  { %267 = vmatprep.mubr.f32.mxu0 %v969_v0  ;;  %338 = vmatprep.mubr.f32.mxu1 %v969_v0 }
  0x2e   :  { %836 = vmatmul.mubr.msk.f32.vlgmr.msra.gmra.mrb[2].mxu0 %vm57_vm0, %v40_v5  ;;  %837 = vmatmul.mubr.msk.f32.vlgmr.msra.gmra.mrb[2].mxu1 %vm57_vm0, %v40_v5  ;;  %p900_p5 = por %p899_p4, %p898_p3 }
  0x2f   :  { %345 = vmatprep.subr.mxu0 %v50_v10  ;;  %416 = vmatprep.subr.mxu1 %v52_v11 }
  0x30   :  { %346 = vmatpush1.msra.mxu0 %v49_v12  ;;  %417 = vmatpush1.msra.mxu1 %v51_v13  ;;  %p901_p6 = pnand %p900_p5, %p894_p2 }
  0x31   :  { %409 = vmatprep.mubr.f32.mxu0 %v969_v0  ;;  %480 = vmatprep.mubr.f32.mxu1 %v969_v0 }
  0x32   :  { %838 = vmatmul.mubr.msk.f32.vlgmr.msra.gmra.mrb[4].mxu0 %vm57_vm0, %v40_v5  ;;  %839 = vmatmul.mubr.msk.f32.vlgmr.msra.gmra.mrb[4].mxu1 %vm57_vm0, %v40_v5 }
  0x33   :  { %487 = vmatprep.subr.mxu0 %v54_v14  ;;  %558 = vmatprep.subr.mxu1 %v56_v15 }
  0x34   :  { %488 = vmatpush1.msra.mxu0 %v53_v16  ;;  %559 = vmatpush1.msra.mxu1 %v55_v17 }
  0x35   :  { %551 = vmatprep.mubr.f32.mxu0 %v969_v0  ;;  %622 = vmatprep.mubr.f32.mxu1 %v969_v0 }
  0x36   :  { %840 = vmatmul.mubr.msk.f32.vlgmr.msra.gmra.mrb[6].mxu0 %vm57_vm0, %v40_v5  ;;  %841 = vmatmul.mubr.msk.f32.vlgmr.msra.gmra.mrb[6].mxu1 %vm57_vm0, %v40_v5 }
  0xfd   :  { %v127_v23 = vpop.f32.mrb[0].mxu0  ;;  %v198_v24 = vpop.f32.mrb[0].mxu1 }
  0xfe   :  { %v129_v26 = vpop.f32.mrb[1].mxu0  ;;  %v200_v27 = vpop.f32.mrb[1].mxu1 }
  0xff   :  { %v645_v28 = vcombine.low %v127_v23, %v129_v26  ;;  %v646_v29 = vcombine.low %v198_v24, %v200_v27 }
 0x101   :  { %v655_v30 = vrot.slane %v645_v28, %v654_v25  ;;  %v662_v31 = vrot.slane %v646_v29, %v654_v25  ;;  %v269_v32 = vpop.f32.mrb[2].mxu0  ;;  %v340_v33 = vpop.f32.mrb[2].mxu1 }
 0x102   :  { %v271_v34 = vpop.f32.mrb[3].mxu0  ;;  %v342_v35 = vpop.f32.mrb[3].mxu1 }
 0x103   :  { %v677_v36 = vcombine.low %v655_v30, %v662_v31  ;;  %v747_v37 = vcombine.high %v655_v30, %v662_v31  ;;  %v647_v38 = vcombine.low %v269_v32, %v271_v34  ;;  %v648_v39 = vcombine.low %v340_v33, %v342_v35 }
 0x105   :  { %v669_v40 = vrot.slane %v647_v38, %v654_v25  ;;  %v676_v41 = vrot.slane %v648_v39, %v654_v25  ;;  %v411_v42 = vpop.f32.mrb[4].mxu0  ;;  %v482_v43 = vpop.f32.mrb[4].mxu1  ;;  %v685_v56 = vrot.slane %v677_v36, %v654_v25  ;;  %v755_v57 = vrot.slane %v747_v37, %v654_v25 }
 0x106   :  { %v413_v44 = vpop.f32.mrb[5].mxu0  ;;  %v484_v45 = vpop.f32.mrb[5].mxu1 }
 0x107   :  { %v678_v46 = vcombine.low %v669_v40, %v676_v41  ;;  %v748_v47 = vcombine.high %v669_v40, %v676_v41  ;;  %v694_v48 = vcombine.low %v411_v42, %v413_v44  ;;  %v695_v49 = vcombine.low %v482_v43, %v484_v45 }
 0x109   :  { %v692_v50 = vrot.slane %v678_v46, %v654_v25  ;;  %v762_v51 = vrot.slane %v748_v47, %v654_v25  ;;  %v704_v52 = vrot.slane %v694_v48, %v654_v25  ;;  %v711_v53 = vrot.slane %v695_v49, %v654_v25  ;;  %v553_v54 = vpop.f32.mrb[6].mxu0  ;;  %v624_v55 = vpop.f32.mrb[6].mxu1 }
 0x10a   :  { %v555_v58 = vpop.f32.mrb[7].mxu0  ;;  %v626_v59 = vpop.f32.mrb[7].mxu1 }
 0x10b   :  { %v726_v60 = vcombine.low %v704_v52, %v711_v53  ;;  %v764_v61 = vcombine.high %v704_v52, %v711_v53  ;;  %v696_v62 = vcombine.low %v553_v54, %v555_v58  ;;  %v697_v63 = vcombine.low %v624_v55, %v626_v59 }
 0x10c   :  { %v763_v0 = vcombine.low %v755_v57, %v762_v51  ;;  %v693_v1 = vcombine.low %v685_v56, %v692_v50  ;;  %v785_v2 = vcombine.high %v685_v56, %v692_v50 }
 0x10d   :  { %v718_v3 = vrot.slane %v696_v62, %v654_v25  ;;  %v725_v4 = vrot.slane %v697_v63, %v654_v25  ;;  %v734_v7 = vrot.slane %v726_v60, %v654_v25  ;;  %v772_v8 = vrot.slane %v764_v61, %v654_v25 }
 0x10e   :  { %783 = vst [vmem:[#allocation8] sm:$0xff] %v763_v0  ;;  %745 = vst [vmem:[#allocation7] sm:$0xff] %v693_v1 }
 0x10f   :  { %789 = vst [vmem:[#allocation10] sm:$0xff] %v785_v2  ;;  %v727_v5 = vcombine.low %v718_v3, %v725_v4  ;;  %v765_v6 = vcombine.high %v718_v3, %v725_v4 }
 0x111   :  { %v741_v9 = vrot.slane %v727_v5, %v654_v25  ;;  %v779_v10 = vrot.slane %v765_v6, %v654_v25 }
 0x113   :  { %v780_v11 = vcombine.low %v772_v8, %v779_v10  ;;  %v742_v12 = vcombine.low %v734_v7, %v741_v9  ;;  %v786_v13 = vcombine.high %v734_v7, %v741_v9 }
 0x115   :  { %784 = vst [vmem:[#allocation8 + $0x8] sm:$0xff] %v780_v11  ;;  %746 = vst [vmem:[#allocation7 + $0x8] sm:$0xff] %v742_v12 }
 0x116   :  { %790 = vst [vmem:[#allocation10 + $0x8] sm:$0xff] %v786_v13 }
 0x117   :  { %904 = shalt.err (!%p901_p6)
}
 0x118   :  { %s905_s20 = scalar_lea.hbm %s1084_s3, 256 }
 0x119   :  { %p906_p7 = scmp.ne.s32.totalorder %s1084_s3, %s905_s20  ;;  %p909_p8 = scmp.lt.u32.totalorder %s905_s20, %s1084_s3 }
 0x11b   :  { %p911_p9 = pnand %p909_p8, %p906_p7 }
 0x11d   :  { %914 = shalt.err (!%p911_p9)
}
 0x11e   :  { %810 = dma.vmem_to_hbm [thread:$0]  %s808_s12, 256, %s1084_s3, [#allocation9]  }
 0x11f   :  { %s915_s27 = scalar_lea.vmem %s1031_s14, 256  ;;  %p920_p11 = scmp.lt.s32.totalorder %s1031_s14, %s1031_s14 }
 0x120   :  { %p916_p10 = scmp.ne.s32.totalorder %s1031_s14, %s915_s27  ;;  %p921_p12 = scmp.lt.s32.totalorder %s915_s27, %s915_s27 }
 0x122   :  { %p922_p13 = por %p921_p12, %p920_p11 }
 0x124   :  { %p923_p0 = pnand %p922_p13, %p916_p10 }
 0x126   :  { %926 = shalt.err (!%p923_p0)
}
 0x127   :  { %s927_s30 = scalar_lea.hbm %s1083_s2, 256 }
 0x128   :  { %p928_p1 = scmp.ne.s32.totalorder %s1083_s2, %s927_s30  ;;  %p931_p2 = scmp.lt.u32.totalorder %s927_s30, %s1083_s2 }
 0x12a   :  { %p933_p3 = pnand %p931_p2, %p928_p1 }
 0x12c   :  { %936 = shalt.err (!%p933_p3)
}
 0x12d   :  { %800 = dma.vmem_to_hbm [thread:$0]  %s1031_s14, 256, %s1083_s2, [#allocation4]  }
 0x12e   :  { %s937_s10 = scalar_lea.vmem %s1033_s16, 256  ;;  %p942_p5 = scmp.lt.s32.totalorder %s1033_s16, %s1033_s16 }
 0x12f   :  { %p938_p4 = scmp.ne.s32.totalorder %s1033_s16, %s937_s10  ;;  %p943_p6 = scmp.lt.s32.totalorder %s937_s10, %s937_s10 }
 0x131   :  { %p944_p7 = por %p943_p6, %p942_p5 }
 0x133   :  { %p945_p8 = pnand %p944_p7, %p938_p4 }
 0x135   :  { %948 = shalt.err (!%p945_p8)
}
 0x136   :  { %s949_s1 = scalar_lea.hbm %s1085_s4, 256 }
 0x137   :  { %p950_p9 = scmp.ne.s32.totalorder %s1085_s4, %s949_s1  ;;  %p953_p10 = scmp.lt.u32.totalorder %s949_s1, %s1085_s4 }
 0x139   :  { %p955_p11 = pnand %p953_p10, %p950_p9 }
 0x13b   :  { %958 = shalt.err (!%p955_p11)
}
 0x13c   :  { %820 = dma.vmem_to_hbm [thread:$0]  %s1033_s16, 256, %s1085_s4, [#allocation9]  }
 0x13d   :  { %963 = dma.done.wait [#allocation4], 256  }
 0x13e   :  { %964 = vsyncadd [#allocation4], 4294967040 }
 0x13f   :  { %965 = dma.done.wait [#allocation9], 512  }
 0x140   :  { %966 = vsyncadd [#allocation9], 4294966784 }
 0x141   :  { %830 = vsyncpa [#allocation3], 1 }
 0x142   :  { %831 = vsyncpa [#allocation6], 1 }
 0x143   :  { %832 = vsyncpa [#allocation4], 1 }
 0x144   :  { %833 = vsyncpa [#allocation9], 1 }

</bundles_post_ra>
